<compile_context>
chip_gen: v5e
topology: v5e:2x2
jax: 0.10.0
libtpu: 0.0.40
codegen_flags: <defaults>
</compile_context>

<pallas_src>
import functools

import numpy as np
import jax
import jax.numpy as jnp
from jax import lax
from jax.experimental import pallas as pl
from jax.experimental.pallas import tpu as pltpu


# ---------------------------------------------------------------------------
# Pallas kernel: "valid" 2-D convolution over one (batch, row-block) tile.
# ---------------------------------------------------------------------------
def _conv_kernel(x_ref, w_ref, b_ref, o_ref, acc_ref, *,
                 KH, KW, S, OW, R, activation):
    # x_ref : (1, 1, BR, S, Wp, Cin)  row-block of the column-phase-split input
    # w_ref : (KH, KW, Cin, Cout)     full weight, VMEM resident
    # b_ref : (1, Cout)
    # o_ref : (1, 1, R, OW, Cout)
    # acc_ref: (OW, Cout) f32 scratch

    def row_body(r, _):
        acc_ref[...] = jnp.zeros_like(acc_ref)

        def kh_body(kh, _):
            acc = acc_ref[...]                      # one load per kh
            row = r * S + kh                        # input row inside the block
            for kw in range(KW):                    # unrolled, <= 17 MXU dots
                ph = kw % S
                off = kw // S
                xs = x_ref[0, 0, row, ph, off:off + OW, :]     # (OW, Cin)
                wk = w_ref[kh, kw, :, :]                        # (Cin, Cout)
                acc = acc + jnp.dot(xs, wk, preferred_element_type=jnp.float32)
            acc_ref[...] = acc                      # one store per kh
            return 0

        lax.fori_loop(0, KH, kh_body, 0)

        res = acc_ref[...] + b_ref[...]
        if activation == "relu":
            res = jnp.maximum(res, 0.0)
        elif activation == "sigmoid":
            res = jax.nn.sigmoid(res)
        o_ref[0, 0, r, :, :] = res.astype(o_ref.dtype)
        return 0

    lax.fori_loop(0, R, row_body, 0)


# ---------------------------------------------------------------------------
# Wrapper: valid 2-D convolution.  x: (N,H,W,Cin), w: (KH,KW,Cin,Cout), b:(Cout,)
# ---------------------------------------------------------------------------
def conv2d_pallas(x, w, b, stride=1, activation="relu",
                  vmem_budget=22 * 1024 * 1024):
    x = x.astype(jnp.float32)
    w = w.astype(jnp.float32)
    b = b.astype(jnp.float32)
    N, H, W, Cin = (int(d) for d in x.shape)
    KH, KW, _, Cout = (int(d) for d in w.shape)
    S = int(stride)
    OH = (H - KH) // S + 1
    OW = (W - KW) // S + 1

    cout_orig = Cout
    # Pad tiny channel counts with zeros (result unchanged) so the lane dim of
    # the matmuls is not degenerate.
    if Cin < 8:
        x = jnp.pad(x, ((0, 0), (0, 0), (0, 0), (0, 8 - Cin)))
        w = jnp.pad(w, ((0, 0), (0, 0), (0, 8 - Cin), (0, 0)))
        Cin = 8
    if Cout < 8:
        w = jnp.pad(w, ((0, 0), (0, 0), (0, 0), (0, 8 - Cout)))
        b = jnp.pad(b, ((0, 8 - Cout),))
        Cout = 8

    # Column-phase split so strided column access is a contiguous in-kernel slice.
    Wp = (KW - 1) // S + OW
    target_w = S * Wp
    if W < target_w:
        x = jnp.pad(x, ((0, 0), (0, 0), (0, target_w - W), (0, 0)))
    elif W > target_w:
        x = x[:, :, :target_w, :]
    xp = x.reshape(N, H, Wp, S, Cin).transpose(0, 1, 3, 2, 4)   # (N, H, S, Wp, Cin)

    # Pick R (output rows per grid step) from the VMEM budget:
    #   weights + 2 * input block + 2 * output block + accumulator.
    in_row_bytes = S * Wp * Cin * 4
    out_row_bytes = OW * Cout * 4
    w_bytes = KH * KW * Cin * Cout * 4
    avail = vmem_budget - w_bytes - 2 * max(KH - S, 0) * in_row_bytes - out_row_bytes
    per_r = 2 * S * in_row_bytes + 2 * out_row_bytes
    R = int(max(1, min(avail // per_r if avail > per_r else 1, OH, 64)))
    NB = int(pl.cdiv(OH, R))
    R = int(pl.cdiv(OH, NB))          # rebalance so the last block is not mostly pad
    NB = int(pl.cdiv(OH, R))
    BR = (R - 1) * S + KH

    # Build overlapping row blocks host-side (cheap gather; keeps BlockSpecs
    # non-overlapping and the last two block dims full-extent).
    H_needed = (NB * R - 1) * S + KH
    if H < H_needed:
        xp = jnp.pad(xp, ((0, 0), (0, H_needed - H), (0, 0), (0, 0), (0, 0)))
    row_idx = np.arange(NB)[:, None] * (R * S) + np.arange(BR)[None, :]   # (NB, BR)
    xb = xp[:, row_idx]                                # (N, NB, BR, S, Wp, Cin)
    b2 = b.reshape(1, Cout)

    kernel = functools.partial(_conv_kernel, KH=KH, KW=KW, S=S, OW=OW, R=R,
                               activation=activation)

    out = pl.pallas_call(
        kernel,
        out_shape=jax.ShapeDtypeStruct((N, NB, R, OW, Cout), jnp.float32),
        grid=(N, NB),
        in_specs=[
            pl.BlockSpec((1, 1, BR, S, Wp, Cin),
                         lambda n, rb: (n, rb, 0, 0, 0, 0)),
            # full weight, constant index map -> fetched once, stays in VMEM
            pl.BlockSpec((KH, KW, Cin, Cout), lambda n, rb: (0, 0, 0, 0)),
            pl.BlockSpec((1, Cout), lambda n, rb: (0, 0)),
        ],
        out_specs=pl.BlockSpec((1, 1, R, OW, Cout),
                               lambda n, rb: (n, rb, 0, 0, 0)),
        scratch_shapes=[pltpu.VMEM((OW, Cout), jnp.float32)],
        compiler_params=pltpu.CompilerParams(
            dimension_semantics=("parallel", "parallel"),
            vmem_limit_bytes=48 * 1024 * 1024,
        ),
    )(xb, w, b2)

    out = out.reshape(N, NB * R, OW, Cout)[:, :OH]
    if cout_orig != Cout:
        out = out[..., :cout_orig]
    return out


def conv2d_ref(x, w, b, stride, activation):
    """Pure-JAX reference (used only in the small self-checks)."""
    out = lax.conv_general_dilated(
        x.astype(jnp.float32), w.astype(jnp.float32),
        window_strides=(stride, stride), padding="VALID",
        dimension_numbers=("NHWC", "HWIO", "NHWC"),
        precision=lax.Precision.HIGHEST)
    out = out + b.reshape(1, 1, 1, -1)
    if activation == "relu":
        out = jnp.maximum(out, 0.0)
    elif activation == "sigmoid":
        out = jax.nn.sigmoid(out)
    return out


# ---------------------------------------------------------------------------
# ConvTranspose2d rewrites
# ---------------------------------------------------------------------------
def _convtranspose_dilate(x, w_t, stride, padding):
    """ConvTranspose2d as a stride-1 valid conv over a zero-dilated input.
    x: (N,H,W,Cin) NHWC.  w_t: torch ConvTranspose2d weight (Cin,Cout,KH,KW)."""
    N, H, W, Cin = x.shape
    KH, KW = int(w_t.shape[2]), int(w_t.shape[3])
    s = int(stride)
    xd = jnp.zeros((N, s * (H - 1) + 1, s * (W - 1) + 1, Cin), x.dtype)
    xd = xd.at[:, ::s, ::s, :].set(x)
    ph, pw = KH - 1 - padding, KW - 1 - padding
    xd = jnp.pad(xd, ((0, 0), (ph, ph), (pw, pw), (0, 0)))
    # flip spatially, swap in/out channels: (Cin,Cout,KH,KW) -> (KH,KW,Cin,Cout)
    w_conv = jnp.transpose(jnp.flip(w_t, axis=(2, 3)), (2, 3, 0, 1))
    return xd, w_conv


def deconv_phased(x, w_t, b, padding):
    """Stride-2 ConvTranspose2d as 4 stride-1 phase convolutions (no MACs on the
    dilation zeros).  x: (N,H,W,Cin) NHWC, w_t: (Cin,Cout,K,K), relu fused."""
    N, H, W, Cin = (int(d) for d in x.shape)
    K = int(w_t.shape[2])
    Cout = int(w_t.shape[1])
    p = int(padding)
    P = K - 1 - p
    OH = 2 * (H - 1) - 2 * p + K
    OW = 2 * (W - 1) - 2 * p + K
    w_conv = jnp.transpose(jnp.flip(w_t, axis=(2, 3)), (2, 3, 0, 1))  # (K,K,Cin,Cout)

    out = jnp.zeros((N, OH, OW, Cout), jnp.float32)
    for rh in (0, 1):
        a_h = (P - rh) % 2
        J_h = (K - a_h + 1) // 2
        d_h = (P - rh - a_h) // 2
        Q_h = (OH - rh + 1) // 2
        pad_bh = Q_h + J_h - H - d_h - 1
        assert d_h >= 0 and pad_bh >= 0
        for rw in (0, 1):
            a_w = (P - rw) % 2
            J_w = (K - a_w + 1) // 2
            d_w = (P - rw - a_w) // 2
            Q_w = (OW - rw + 1) // 2
            pad_bw = Q_w + J_w - W - d_w - 1
            assert d_w >= 0 and pad_bw >= 0
            xs = jnp.pad(x, ((0, 0), (d_h, pad_bh), (d_w, pad_bw), (0, 0)))
            wsub = w_conv[a_h::2, a_w::2, :, :]          # (J_h, J_w, Cin, Cout)
            ph = conv2d_pallas(xs, wsub, b, 1, "relu")   # (N, Q_h, Q_w, Cout)
            out = out.at[:, rh::2, rw::2, :].set(ph)
    return out


# ---------------------------------------------------------------------------
# DeconvModel4x forward
# ---------------------------------------------------------------------------
def forward(params, x):
    """x: (N, 1140) -> (N, 135, 103)."""
    N = x.shape[0]
    fr = x.reshape(N, 1, 38, 30)[:, :, 2::4, 2::4]             # NCHW (N,1,9,7)
    h = jnp.transpose(fr, (0, 2, 3, 1)).astype(jnp.float32)    # NHWC

    # Small transposed convs: zero-dilation rewrite (negligible compute).
    for name, pad in (("ct1", 0), ("ct2", 2), ("ct3", 3), ("ct4", 4)):
        xd, wc = _convtranspose_dilate(h, params[name + "_w"], 2, pad)
        h = conv2d_pallas(xd, wc, params[name + "_b"], 1, "relu")

    # Large transposed convs: 4-phase decomposition.
    for name in ("ct5", "ct6"):
        h = deconv_phased(h, params[name + "_w"], params[name + "_b"], padding=0)

    # Conv2d stack.
    for name, stride, act in (("shaper0", 2, "relu"), ("shaper", 2, "relu"),
                              ("med", 1, "relu"), ("details", 1, "relu"),
                              ("details2", 1, "sigmoid")):
        w = jnp.transpose(params[name + "_w"], (2, 3, 1, 0))   # OIHW -> HWIO
        h = conv2d_pallas(h, w, params[name + "_b"], stride, act)

    return h[..., 0]   # torch.squeeze(t4, dim=1)


def init_params(key):
    layer_defs = (
        # name, torch weight shape, bias dim, is_transposed
        ("ct1", (1, 16, 3, 3), 16, True),
        ("ct2", (16, 32, 5, 5), 32, True),
        ("ct3", (32, 32, 7, 7), 32, True),
        ("ct4", (32, 32, 9, 9), 32, True),
        ("ct5", (32, 64, 15, 15), 64, True),
        ("ct6", (64, 128, 17, 17), 128, True),
        ("shaper0", (64, 128, 17, 17), 64, False),
        ("shaper", (32, 64, 15, 15), 32, False),
        ("med", (32, 32, 7, 7), 32, False),
        ("details", (32, 32, 3, 3), 32, False),
        ("details2", (1, 32, 3, 3), 1, False),
    )
    params = {}
    keys = jax.random.split(key, len(layer_defs))
    for lk, (name, wshape, bdim, is_t) in zip(keys, layer_defs):
        kw_, kb_ = jax.random.split(lk)
        cin = wshape[0] if is_t else wshape[1]
        scale = 1.0 / float(np.sqrt(cin * wshape[2] * wshape[3]))
        params[name + "_w"] = jax.random.normal(kw_, wshape, jnp.float32) * scale
        params[name + "_b"] = jax.random.normal(kb_, (bdim,), jnp.float32) * 0.01
    return params


def _self_check_small():
    """Cheap correctness checks of the two non-trivial building blocks."""
    key = jax.random.PRNGKey(42)
    k1, k2, k3, k4, k5, k6 = jax.random.split(key, 6)

    # strided Conv2d path vs XLA reference
    x = jax.random.normal(k1, (1, 13, 12, 5), jnp.float32)
    w = jax.random.normal(k2, (3, 5, 5, 6), jnp.float32) * 0.2
    b = jax.random.normal(k3, (6,), jnp.float32)
    got = conv2d_pallas(x, w, b, 2, "relu")
    want = conv2d_ref(x, w, b, 2, "relu")
    np.testing.assert_allclose(np.asarray(got), np.asarray(want),
                               atol=1e-4, rtol=1e-4)

    # phase-decomposed ConvTranspose2d vs the dilated-input reference
    xt = jax.random.normal(k4, (1, 6, 5, 4), jnp.float32)
    wt = jax.random.normal(k5, (4, 7, 5, 5), jnp.float32) * 0.2   # (Cin,Cout,K,K)
    bt = jax.random.normal(k6, (7,), jnp.float32)
    got = deconv_phased(xt, wt, bt, padding=0)
    xd, wc = _convtranspose_dilate(xt, wt, 2, 0)
    want = conv2d_ref(xd, wc, bt, 1, "relu")
    np.testing.assert_allclose(np.asarray(got), np.asarray(want),
                               atol=1e-4, rtol=1e-4)


if __name__ == "__main__":
    _self_check_small()

    key = jax.random.PRNGKey(0)
    pkey, xkey = jax.random.split(key)
    params = init_params(pkey)
    x = jax.random.normal(xkey, (1, 1140), dtype=jnp.float32)   # 1140 = 38 * 30

    fwd = jax.jit(forward)
    out = jax.block_until_ready(fwd(params, x))
    assert out.shape == (1, 135, 103), out.shape
    assert np.all(np.isfinite(np.asarray(out)))

    print("KERNEL_OK")
</pallas_src>

<mosaic_0001>
module attributes {stable_mosaic.version = 11 : i64} {
  func.func @_conv_kernel(%arg0: i32, %arg1: i32, %arg2: memref<1x1x13x2x6x8xf32, #tpu.memory_space<vmem>>, %arg3: memref<3x5x8x8xf32, #tpu.memory_space<vmem>>, %arg4: memref<1x8xf32, #tpu.memory_space<vmem>>, %arg5: memref<1x1x6x4x8xf32, #tpu.memory_space<vmem>>, %arg6: memref<4x8xf32, #tpu.memory_space<vmem>>) attributes {dimension_semantics = [#tpu.dimension_semantics<parallel>, #tpu.dimension_semantics<parallel>], iteration_bounds = array<i64: 1, 1>, scalar_prefetch = 0 : i64, scratch_operands = 1 : i64, tpu.core_type = #tpu.core_type<tc>, window_params = [{transform_indices = @transform_0, window_bounds = array<i64: 1, 1, 13, 2, 6, 8>}, {pipeline_mode = #tpu.pipeline_mode<synchronous>, transform_indices = @transform_1, window_bounds = array<i64: 3, 5, 8, 8>}, {pipeline_mode = #tpu.pipeline_mode<synchronous>, transform_indices = @transform_2, window_bounds = array<i64: 1, 8>}, {transform_indices = @transform_3, window_bounds = array<i64: 1, 1, 6, 4, 8>}]} {
    %c0_i32 = arith.constant 0 : i32
    %c6_i32 = arith.constant 6 : i32
    %0 = arith.addi %c0_i32, %c6_i32 : i32
    %c1_i32 = arith.constant 1 : i32
    scf.for %arg7 = %c0_i32 to %0 step %c1_i32  : i32 {
      %cst = arith.constant 0.000000e+00 : f32
      %1 = vector.broadcast %cst : f32 to vector<4x8xf32>
      %c0 = arith.constant 0 : index
      %c0_1 = arith.constant 0 : index
      %2 = vector.load %arg6[%c0, %c0_1] : memref<4x8xf32, #tpu.memory_space<vmem>>, vector<4x8xf32>
      tpu.vector_store %arg6[%c0, %c0_1], %1 {strides = array<i32>} : memref<4x8xf32, #tpu.memory_space<vmem>>, vector<4x8xf32>,
      %c0_i32_2 = arith.constant 0 : i32
      %c3_i32 = arith.constant 3 : i32
      %3 = arith.addi %c0_i32_2, %c3_i32 : i32
      %c1_i32_3 = arith.constant 1 : i32
      scf.for %arg8 = %c0_i32_2 to %3 step %c1_i32_3  : i32 {
        %c0_14 = arith.constant 0 : index
        %c0_15 = arith.constant 0 : index
        %14 = vector.load %arg6[%c0_14, %c0_15] : memref<4x8xf32, #tpu.memory_space<vmem>>, vector<4x8xf32>
        %c2_i32 = arith.constant 2 : i32
        %15 = arith.muli %arg7, %c2_i32 : i32
        %16 = arith.addi %15, %arg8 : i32
        %c0_16 = arith.constant 0 : index
        %c0_17 = arith.constant 0 : index
        %17 = arith.index_cast %16 : i32 to index
        %c0_18 = arith.constant 0 : index
        %c0_19 = arith.constant 0 : index
        %c0_20 = arith.constant 0 : index
        %18 = vector.load %arg2[%c0_16, %c0_17, %17, %c0_18, %c0_19, %c0_20] : memref<1x1x13x2x6x8xf32, #tpu.memory_space<vmem>>, vector<1x1x1x1x4x8xf32>
        %19 = vector.shape_cast %18 : vector<1x1x1x1x4x8xf32> to vector<4x8xf32>
        %20 = arith.index_cast %arg8 : i32 to index
        %c0_21 = arith.constant 0 : index
        %c0_22 = arith.constant 0 : index
        %c0_23 = arith.constant 0 : index
        %21 = vector.load %arg3[%20, %c0_21, %c0_22, %c0_23] : memref<3x5x8x8xf32, #tpu.memory_space<vmem>>, vector<1x1x8x8xf32>
        %22 = vector.shape_cast %21 : vector<1x1x8x8xf32> to vector<8x8xf32>
        %cst_24 = arith.constant dense<0.000000e+00> : vector<4x8xf32>
        %23 = tpu.matmul %19, %22, %cst_24 {dimension_numbers = #tpu.dot_dimension_numbers<[1], [0], [0], [1], [0, 0, 1, 1], [], []>} : vector<4x8xf32>, vector<8x8xf32>, vector<4x8xf32> -> vector<4x8xf32>
        %24 = arith.addf %14, %23 : vector<4x8xf32>
        %c0_25 = arith.constant 0 : index
        %c0_26 = arith.constant 0 : index
        %25 = arith.index_cast %16 : i32 to index
        %c1 = arith.constant 1 : index
        %c0_27 = arith.constant 0 : index
        %c0_28 = arith.constant 0 : index
        %26 = vector.load %arg2[%c0_25, %c0_26, %25, %c1, %c0_27, %c0_28] : memref<1x1x13x2x6x8xf32, #tpu.memory_space<vmem>>, vector<1x1x1x1x4x8xf32>
        %27 = vector.shape_cast %26 : vector<1x1x1x1x4x8xf32> to vector<4x8xf32>
        %28 = arith.index_cast %arg8 : i32 to index
        %c1_29 = arith.constant 1 : index
        %c0_30 = arith.constant 0 : index
        %c0_31 = arith.constant 0 : index
        %29 = vector.load %arg3[%28, %c1_29, %c0_30, %c0_31] : memref<3x5x8x8xf32, #tpu.memory_space<vmem>>, vector<1x1x8x8xf32>
        %30 = vector.shape_cast %29 : vector<1x1x8x8xf32> to vector<8x8xf32>
        %cst_32 = arith.constant dense<0.000000e+00> : vector<4x8xf32>
        %31 = tpu.matmul %27, %30, %cst_32 {dimension_numbers = #tpu.dot_dimension_numbers<[1], [0], [0], [1], [0, 0, 1, 1], [], []>} : vector<4x8xf32>, vector<8x8xf32>, vector<4x8xf32> -> vector<4x8xf32>
        %32 = arith.addf %24, %31 : vector<4x8xf32>
        %c0_33 = arith.constant 0 : index
        %c0_34 = arith.constant 0 : index
        %33 = arith.index_cast %16 : i32 to index
        %c0_35 = arith.constant 0 : index
        %c1_36 = arith.constant 1 : index
        %c0_37 = arith.constant 0 : index
        %34 = vector.load %arg2[%c0_33, %c0_34, %33, %c0_35, %c1_36, %c0_37] : memref<1x1x13x2x6x8xf32, #tpu.memory_space<vmem>>, vector<1x1x1x1x4x8xf32>
        %35 = vector.shape_cast %34 : vector<1x1x1x1x4x8xf32> to vector<4x8xf32>
        %36 = arith.index_cast %arg8 : i32 to index
        %c2 = arith.constant 2 : index
        %c0_38 = arith.constant 0 : index
        %c0_39 = arith.constant 0 : index
        %37 = vector.load %arg3[%36, %c2, %c0_38, %c0_39] : memref<3x5x8x8xf32, #tpu.memory_space<vmem>>, vector<1x1x8x8xf32>
        %38 = vector.shape_cast %37 : vector<1x1x8x8xf32> to vector<8x8xf32>
        %cst_40 = arith.constant dense<0.000000e+00> : vector<4x8xf32>
        %39 = tpu.matmul %35, %38, %cst_40 {dimension_numbers = #tpu.dot_dimension_numbers<[1], [0], [0], [1], [0, 0, 1, 1], [], []>} : vector<4x8xf32>, vector<8x8xf32>, vector<4x8xf32> -> vector<4x8xf32>
        %40 = arith.addf %32, %39 : vector<4x8xf32>
        %c0_41 = arith.constant 0 : index
        %c0_42 = arith.constant 0 : index
        %41 = arith.index_cast %16 : i32 to index
        %c1_43 = arith.constant 1 : index
        %c1_44 = arith.constant 1 : index
        %c0_45 = arith.constant 0 : index
        %42 = vector.load %arg2[%c0_41, %c0_42, %41, %c1_43, %c1_44, %c0_45] : memref<1x1x13x2x6x8xf32, #tpu.memory_space<vmem>>, vector<1x1x1x1x4x8xf32>
        %43 = vector.shape_cast %42 : vector<1x1x1x1x4x8xf32> to vector<4x8xf32>
        %44 = arith.index_cast %arg8 : i32 to index
        %c3 = arith.constant 3 : index
        %c0_46 = arith.constant 0 : index
        %c0_47 = arith.constant 0 : index
        %45 = vector.load %arg3[%44, %c3, %c0_46, %c0_47] : memref<3x5x8x8xf32, #tpu.memory_space<vmem>>, vector<1x1x8x8xf32>
        %46 = vector.shape_cast %45 : vector<1x1x8x8xf32> to vector<8x8xf32>
        %cst_48 = arith.constant dense<0.000000e+00> : vector<4x8xf32>
        %47 = tpu.matmul %43, %46, %cst_48 {dimension_numbers = #tpu.dot_dimension_numbers<[1], [0], [0], [1], [0, 0, 1, 1], [], []>} : vector<4x8xf32>, vector<8x8xf32>, vector<4x8xf32> -> vector<4x8xf32>
        %48 = arith.addf %40, %47 : vector<4x8xf32>
        %c0_49 = arith.constant 0 : index
        %c0_50 = arith.constant 0 : index
        %49 = arith.index_cast %16 : i32 to index
        %c0_51 = arith.constant 0 : index
        %c2_52 = arith.constant 2 : index
        %c0_53 = arith.constant 0 : index
        %50 = vector.load %arg2[%c0_49, %c0_50, %49, %c0_51, %c2_52, %c0_53] : memref<1x1x13x2x6x8xf32, #tpu.memory_space<vmem>>, vector<1x1x1x1x4x8xf32>
        %51 = vector.shape_cast %50 : vector<1x1x1x1x4x8xf32> to vector<4x8xf32>
        %52 = arith.index_cast %arg8 : i32 to index
        %c4 = arith.constant 4 : index
        %c0_54 = arith.constant 0 : index
        %c0_55 = arith.constant 0 : index
        %53 = vector.load %arg3[%52, %c4, %c0_54, %c0_55] : memref<3x5x8x8xf32, #tpu.memory_space<vmem>>, vector<1x1x8x8xf32>
        %54 = vector.shape_cast %53 : vector<1x1x8x8xf32> to vector<8x8xf32>
        %cst_56 = arith.constant dense<0.000000e+00> : vector<4x8xf32>
        %55 = tpu.matmul %51, %54, %cst_56 {dimension_numbers = #tpu.dot_dimension_numbers<[1], [0], [0], [1], [0, 0, 1, 1], [], []>} : vector<4x8xf32>, vector<8x8xf32>, vector<4x8xf32> -> vector<4x8xf32>
        %56 = arith.addf %48, %55 : vector<4x8xf32>
        %c0_57 = arith.constant 0 : index
        %c0_58 = arith.constant 0 : index
        %57 = vector.load %arg6[%c0_57, %c0_58] : memref<4x8xf32, #tpu.memory_space<vmem>>, vector<4x8xf32>
        tpu.vector_store %arg6[%c0_57, %c0_58], %56 {strides = array<i32>} : memref<4x8xf32, #tpu.memory_space<vmem>>, vector<4x8xf32>,
      }
      %c3_i32_4 = arith.constant 3 : i32
      %c0_5 = arith.constant 0 : index
      %c0_6 = arith.constant 0 : index
      %4 = vector.load %arg6[%c0_5, %c0_6] : memref<4x8xf32, #tpu.memory_space<vmem>>, vector<4x8xf32>
      %c0_7 = arith.constant 0 : index
      %c0_8 = arith.constant 0 : index
      %5 = vector.load %arg4[%c0_7, %c0_8] : memref<1x8xf32, #tpu.memory_space<vmem>>, vector<1x8xf32>
      %6 = vector.broadcast %5 : vector<1x8xf32> to vector<4x8xf32>
      %7 = arith.addf %4, %6 : vector<4x8xf32>
      %cst_9 = arith.constant 0.000000e+00 : f32
      %8 = vector.broadcast %cst_9 : f32 to vector<4x8xf32>
      %9 = arith.maximumf %7, %8 : vector<4x8xf32>
      %c0_10 = arith.constant 0 : index
      %c0_11 = arith.constant 0 : index
      %10 = arith.index_cast %arg7 : i32 to index
      %c0_12 = arith.constant 0 : index
      %c0_13 = arith.constant 0 : index
      %11 = vector.load %arg5[%c0_10, %c0_11, %10, %c0_12, %c0_13] : memref<1x1x6x4x8xf32, #tpu.memory_space<vmem>>, vector<1x1x1x4x8xf32>
      %12 = vector.shape_cast %11 : vector<1x1x1x4x8xf32> to vector<4x8xf32>
      %13 = vector.shape_cast %9 : vector<4x8xf32> to vector<1x1x1x4x8xf32>
      tpu.vector_store %arg5[%c0_10, %c0_11, %10, %c0_12, %c0_13], %13 {strides = array<i32>} : memref<1x1x6x4x8xf32, #tpu.memory_space<vmem>>, vector<1x1x1x4x8xf32>,
    }
    %c6_i32_0 = arith.constant 6 : i32
    return
  }
  func.func @transform_0(%arg0: i32, %arg1: i32) -> (i32, i32, i32, i32, i32, i32) {
    %c0_i32 = arith.constant 0 : i32
    %c0_i32_0 = arith.constant 0 : i32
    %c0_i32_1 = arith.constant 0 : i32
    %c0_i32_2 = arith.constant 0 : i32
    %c0_i32_3 = arith.constant 0 : i32
    return %arg0, %arg1, %c0_i32, %c0_i32_0, %c0_i32_1, %c0_i32_2 : i32, i32, i32, i32, i32, i32
  }
  func.func @transform_1(%arg0: i32, %arg1: i32) -> (i32, i32, i32, i32) {
    %c0_i32 = arith.constant 0 : i32
    %c0_i32_0 = arith.constant 0 : i32
    %c0_i32_1 = arith.constant 0 : i32
    %c0_i32_2 = arith.constant 0 : i32
    %c0_i32_3 = arith.constant 0 : i32
    return %c0_i32, %c0_i32_0, %c0_i32_1, %c0_i32_2 : i32, i32, i32, i32
  }
  func.func @transform_2(%arg0: i32, %arg1: i32) -> (i32, i32) {
    %c0_i32 = arith.constant 0 : i32
    %c0_i32_0 = arith.constant 0 : i32
    %c0_i32_1 = arith.constant 0 : i32
    return %c0_i32, %c0_i32_0 : i32, i32
  }
  func.func @transform_3(%arg0: i32, %arg1: i32) -> (i32, i32, i32, i32, i32) {
    %c0_i32 = arith.constant 0 : i32
    %c0_i32_0 = arith.constant 0 : i32
    %c0_i32_1 = arith.constant 0 : i32
    %c0_i32_2 = arith.constant 0 : i32
    return %arg0, %arg1, %c0_i32, %c0_i32_0, %c0_i32_1 : i32, i32, i32, i32, i32
  }
}

</mosaic_0001>

<bundles_post_ra>
// kernel: tpu_custom_call.1
= control target key start
LH: loop header
LB: loop body
LE: loop exit
PB: predicated region body
PF: predicated region fallthrough
CT: control target
= control target key end

     0   :  { %8 = vsyncpa [#allocation4], 0  ;;  %s344_s12 = smov 0   ;;  %s384_s0 = inlined_call_operand.vmem [shape: f32[1,1,13,2,6,8], index: 0, kind: input, shape index: {}]   ;;  %s385_s1 = inlined_call_operand.vmem [shape: f32[3,5,8,8], index: 1, kind: input, shape index: {}]   ;;  %s386_s2 = inlined_call_operand.vmem [shape: f32[1,8], index: 2, kind: input, shape index: {}]   ;;  %s387_s3 = inlined_call_operand.hbm [shape: f32[1,1,6,4,8], index: 3, kind: output, shape index: {}]  }
   0x1 LB: > { %vm21_vm0 = vcmask 60416   ;;  %v320_v0 = vmov 0.0   ;;  %s350_s13 = smov 0   ;;  %s314_s12 = sphi %s344_s12, %s20_s12  }
   0x2   : > { %22 = vst.msk [vmem:[#allocation2] sm:$0xf] %vm21_vm0, %v320_v0 }
   0x3 LB: >> { %s241_s14 = sshll.u32 %s314_s12, 1  ;;  %s35_s15 = smul.u32 40, %s318_s13  ;;  %vm38_vm1 = vcmask 64512   ;;  %s318_s13 = sphi %s350_s13, %s28_s13  }
   0x4   : >> { %s31_s16 = sadd.s32 %s318_s13, %s241_s14  ;;  %s28_s13 = sadd.s32 1, %s318_s13  }
   0x5   : >> { %s242_s17 = sshll.u32 %s31_s16, 4  ;;  %s36_s20 = scalar_lea.vmem %s385_s1, %s35_s15 }
   0x6   : >> { %s33_s23 = scalar_lea.vmem %s384_s0, %s242_s17  ;;  %v249_v1 = vld [vmem:[%s36_s20 + $0x10] sm:$0xff]  ;;  %v37_v3 = vld [vmem:[%s36_s20] sm:$0xff]  ;;  %v252_v4 = vld [vmem:[%s36_s20 + $0x18] sm:$0xff]  ;;  %p25_p0 = scmp.ge.s32.totalorder %s28_s13, 3  }
   0x7   : >> { %v93_v2 = vld [vmem:[%s33_s23 + $0x1] sm:$0xf]  ;;  %115 = vmatpush.msra.mxu2 %v249_v1  ;;  %57 = vmatpush.msra.mxu0 %v37_v3  ;;  %v251_v6 = vld [vmem:[%s33_s23 + $0x9] sm:$0xf]  ;;  %v277_v23 = vld [vmem:[%s386_s2] ss:$0 sm:$0xff] (%p25_p0) }
   0x8   : >> { %v34_v5 = vld [vmem:[%s33_s23] sm:$0xf]  ;;  %250 = vmatmul.msk.f32.vlgmr.msra.gmra.mxu2 %vm38_vm1, %v93_v2  ;;  %143 = vmatpush.msra.mxu3 %v252_v4  ;;  %v247_v8 = vld [vmem:[%s36_s20 + $0x8] sm:$0xff]  ;;  %s256_s26 = sshll.u32 (%p25_p0), %s314_s12, 2  ;;  %s20_s12 = sadd.s32 (%p25_p0), 1, %s314_s12  }
   0x9   : >> { %v254_v7 = vld [vmem:[%s36_s20 + $0x20] sm:$0xff]  ;;  %v246_v9 = vld [vmem:[%s33_s23 + $0x8] sm:$0xf]  ;;  %243 = vmatmul.msk.f32.vlgmr.msra.gmra.mxu0 %vm38_vm1, %v34_v5  ;;  %253 = vmatmul.msk.f32.vlgmr.msra.gmra.mxu3 %vm38_vm1, %v251_v6  ;;  %s186_s27 = scalar_lea.vmem (%p25_p0), [#allocation3], %s256_s26  ;;  %p17_p1 = scmp.ge.s32.totalorder (%p25_p0), %s20_s12, 6  }
   0xa   : >> { %171 = vmatpush.msrb.mxu0 %v254_v7  ;;  %87 = vmatpush.msra.mxu1 %v247_v8  ;;  %v149_v10 = vld [vmem:[%s33_s23 + $0x2] sm:$0xf] }
   0xb   : >> { %248 = vmatmul.msk.f32.vlgmr.msra.gmra.mxu1 %vm38_vm1, %v246_v9  ;;  %v29_v11 = vld [vmem:[#allocation2] sm:$0xf] }
  0x11   : >> { %255 = vmatmul.msk.f32.vlgmr.msrb.gmra.mxu0 %vm38_vm1, %v149_v10 }
  0x86   : >> { %v59_v12 = vpop.f32.mrf.mxu0 }
  0x87   : >> { %v62_v13 = vadd.f32 %v59_v12, %v29_v11 }
  0x88   : >> { %v89_v14 = vpop.f32.mrf.mxu1 }
  0x89   : >> { %v92_v15 = vadd.f32 %v89_v14, %v62_v13 }
  0x8b   : >> { %v117_v16 = vpop.f32.mrf.mxu2 }
  0x8c   : >> { %v120_v17 = vadd.f32 %v117_v16, %v92_v15  ;;  %v145_v18 = vpop.f32.mrf.mxu3 }
  0x8e   : >> { %v148_v19 = vadd.f32 %v145_v18, %v120_v17  ;;  %v173_v20 = vpop.f32.mrf.mxu0  ;;  %27 = sbr.rel (!%p25_p0) target bundleno = 3 (0x3), region = 54 }
  0x90   : >> { %v176_v21 = vadd.f32 %v173_v20, %v148_v19 }
  0x92   : >> { %177 = vst.msk [vmem:[#allocation2] sm:$0xf] %vm21_vm0, %v176_v21 }
  0x93   :  { %s194_s30 = sshll.u32 (%p17_p1), %s387_s3, 4  ;;  %s321_s4 = smov (%p17_p1), [#allocation3]   ;;  %s195_s30 = int_to_ptr.hbm [resolvable:$true] %s194_s30 }
  0x94   :  { %s192_s5 = sshll.u32 (%p17_p1), %s321_s4, 4  ;;  %s322_s6 = smov (%p17_p1), 64   ;;  %s193_s5 = int_to_ptr.vmem [resolvable:$true] %s192_s5 }
  0x95   :  { %s323_s7 = smov (%p17_p1), 4  }
  0x99   : > { %v178_v22 = vld [vmem:[#allocation2] sm:$0xf] }
  0x9a   : > { %v183_v24 = vadd.f32 %v277_v23, %v178_v22  ;;  %19 = sbr.rel (!%p17_p1) target bundleno = 1 (0x1), region = 65 }
  0x9c   : > { %v184_v25 = vmax.f32 %v183_v24, 0.0 }
  0x9e   : > { %187 = vst.msk [vmem:[%s186_s27] sm:$0xf] %vm21_vm0, %v184_v25 }
  0x9f   :  { %200 = dma.vmem_to_hbm [thread:$0]  %s193_s5, 384, %s195_s30, [#allocation4], %s322_s6, %s322_s6, %s323_s7  }
  0xa0   :  { %310 = dma.done.wait [#allocation4], 384  }
  0xa1   :  { %311 = vsyncadd [#allocation4], 4294966912 }
  0xa2   :  { %205 = vsyncpa [#allocation4], 1 }

</bundles_post_ra>
